<compile_context>
chip_gen: v7x
topology: tpu7x:2x2x1
jax: 0.10.0
libtpu: 0.0.40
codegen_flags: <defaults>
</compile_context>

<pallas_src>
import functools

import jax
import jax.numpy as jnp
from jax.experimental import pallas as pl
from jax.experimental.pallas import tpu as pltpu


def _round_up(x, m):
    return ((x + m - 1) // m) * m


def _batch_tiling(B, max_block=2048):
    """Pick (batch tile, grid steps, padded batch).

    Single grid step for B <= max_block (kernel is per-step-overhead-bound);
    even step count for larger B so the "parallel" batch axis splits evenly
    across v7x's two TensorCores.
    """
    b8 = _round_up(B, 8)
    if b8 <= max_block:
        steps = 1
    else:
        steps = -(-b8 // max_block)
        if steps % 2:
            steps += 1
    bm = _round_up(-(-b8 // steps), 8)
    return bm, steps, bm * steps


# ----------------------------- kernels ------------------------------------- #

def _dqn_kernel(x_ref, w1_ref, b1_ref, w2_ref, b2_ref, w3_ref, b3_ref, o_ref):
    # Cast x to the weight dtype inside the kernel (VPU cast hides under MXU/DMA
    # slack; no-op in the f32 path). Accumulate every matmul in f32.
    x = x_ref[...].astype(w1_ref.dtype)
    h1 = jnp.dot(x, w1_ref[...], preferred_element_type=jnp.float32)
    h1 = jnp.maximum(h1 + b1_ref[...], 0.0)
    h2 = jnp.dot(h1.astype(w2_ref.dtype), w2_ref[...],
                 preferred_element_type=jnp.float32)
    h2 = jnp.maximum(h2 + b2_ref[...], 0.0)
    out = jnp.dot(h2.astype(w3_ref.dtype), w3_ref[...],
                  preferred_element_type=jnp.float32)
    o_ref[...] = (out + b3_ref[...]).astype(o_ref.dtype)


def _dqn_argmax_kernel(n_act, x_ref, w1_ref, b1_ref, w2_ref, b2_ref, w3_ref,
                       b3_ref, a_ref):
    """Fused forward + greedy action selection: writes argmax_a Q(s, a) only."""
    x = x_ref[...].astype(w1_ref.dtype)
    h1 = jnp.maximum(
        jnp.dot(x, w1_ref[...], preferred_element_type=jnp.float32) + b1_ref[...],
        0.0)
    h2 = jnp.maximum(
        jnp.dot(h1.astype(w2_ref.dtype), w2_ref[...],
                preferred_element_type=jnp.float32) + b2_ref[...], 0.0)
    q = jnp.dot(h2.astype(w3_ref.dtype), w3_ref[...],
                preferred_element_type=jnp.float32) + b3_ref[...]
    lane = jax.lax.broadcasted_iota(jnp.int32, q.shape, 1)
    q = jnp.where(lane < n_act, q, -jnp.inf)          # mask padded action lanes
    max_q = jnp.max(q, axis=-1, keepdims=True)
    # First index attaining the max (PyTorch argmax tie-break), via f32 min.
    lane_f = lane.astype(jnp.float32)
    idx = jnp.where(q >= max_q, lane_f, jnp.float32(q.shape[-1]))
    a_ref[...] = jnp.min(idx, axis=-1, keepdims=True).astype(jnp.int32)


# ----------------------------- wrappers ------------------------------------ #

def prepare_params(params, *, use_bf16=True):
    """One-time preprocessing (call OUTSIDE the training/inference hot loop):
    pad layer3 to a lane-dense 128-wide slab and cast weights to the matmul
    dtype (bf16 by default; f32 accumulation happens inside the kernel)."""
    n_act = params["w3"].shape[1]
    n_act_pad = _round_up(n_act, 128)
    mm_dtype = jnp.bfloat16 if use_bf16 else jnp.float32
    w3 = jnp.pad(params["w3"], ((0, 0), (0, n_act_pad - n_act)))
    b3 = jnp.pad(params["b3"], ((0, 0), (0, n_act_pad - n_act)))
    return {
        "w1": params["w1"].astype(mm_dtype),
        "b1": params["b1"].astype(jnp.float32),
        "w2": params["w2"].astype(mm_dtype),
        "b2": params["b2"].astype(jnp.float32),
        "w3": w3.astype(mm_dtype),
        "b3": b3.astype(jnp.float32),
    }


def _common_specs(params, bm, n_obs):
    resident = lambda a: pl.BlockSpec(a.shape, lambda i: (0,) * a.ndim)
    in_specs = [
        pl.BlockSpec((bm, n_obs), lambda i: (i, 0)),   # x tile along batch
        resident(params["w1"]), resident(params["b1"]),
        resident(params["w2"]), resident(params["b2"]),
        resident(params["w3"]), resident(params["b3"]),
    ]
    return in_specs


@functools.partial(jax.jit, static_argnames=("n_actions", "block_b"))
def dqn_forward(x, params, n_actions, *, block_b=2048):
    """Fused DQN forward pass. `params` must come from `prepare_params`.

    x: [B, n_obs] f32.  Returns [B, n_actions] f32 Q-values.
    """
    B, n_obs = x.shape
    hidden = params["w1"].shape[1]
    n_act_pad = params["w3"].shape[1]

    bm, steps, b_pad = _batch_tiling(B, block_b)
    x_pad = jnp.pad(x, ((0, b_pad - B), (0, 0)))

    w_isz = params["w1"].dtype.itemsize
    cost = pl.CostEstimate(
        flops=2 * b_pad * (n_obs * hidden + hidden * hidden + hidden * n_act_pad),
        transcendentals=0,
        bytes_accessed=(b_pad * n_obs * 4
                        + ((n_obs + hidden) * hidden + hidden * n_act_pad) * w_isz
                        + (2 * hidden + n_act_pad) * 4
                        + b_pad * n_act_pad * 4),
    )

    out_pad = pl.pallas_call(
        _dqn_kernel,
        out_shape=jax.ShapeDtypeStruct((b_pad, n_act_pad), jnp.float32),
        grid_spec=pltpu.PrefetchScalarGridSpec(
            num_scalar_prefetch=0,
            grid=(steps,),
            in_specs=_common_specs(params, bm, n_obs),
            out_specs=pl.BlockSpec((bm, n_act_pad), lambda i: (i, 0)),
        ),
        compiler_params=pltpu.CompilerParams(
            dimension_semantics=("parallel",),   # megacore batch split on v7x
        ),
        cost_estimate=cost,
    )(x_pad, params["w1"], params["b1"], params["w2"], params["b2"],
      params["w3"], params["b3"])

    return out_pad[:B, :n_actions]


@functools.partial(jax.jit, static_argnames=("n_actions", "block_b"))
def dqn_select_action(x, params, n_actions, *, block_b=2048):
    """Fused forward + greedy argmax (exploitation path): returns [B] int32
    actions without ever writing the padded Q slab to HBM."""
    B, n_obs = x.shape
    bm, steps, b_pad = _batch_tiling(B, block_b)
    x_pad = jnp.pad(x, ((0, b_pad - B), (0, 0)))

    act_pad = pl.pallas_call(
        functools.partial(_dqn_argmax_kernel, n_actions),
        out_shape=jax.ShapeDtypeStruct((b_pad, 1), jnp.int32),
        grid_spec=pltpu.PrefetchScalarGridSpec(
            num_scalar_prefetch=0,
            grid=(steps,),
            in_specs=_common_specs(params, bm, n_obs),
            out_specs=pl.BlockSpec((bm, 1), lambda i: (i, 0)),
        ),
        compiler_params=pltpu.CompilerParams(
            dimension_semantics=("parallel",),
        ),
    )(x_pad, params["w1"], params["b1"], params["w2"], params["b2"],
      params["w3"], params["b3"])

    return act_pad[:B, 0]


# ----------------------------- reference / init ----------------------------- #

def init_params(key, n_observations, n_actions, hidden=128):
    """Deterministic PyTorch-style init: U(-1/sqrt(fan_in), 1/sqrt(fan_in))."""
    ks = jax.random.split(key, 6)

    def lin(kw, kb, fan_in, fan_out):
        bound = 1.0 / jnp.sqrt(jnp.float32(fan_in))
        w = jax.random.uniform(kw, (fan_in, fan_out), jnp.float32, -bound, bound)
        b = jax.random.uniform(kb, (1, fan_out), jnp.float32, -bound, bound)
        return w, b

    w1, b1 = lin(ks[0], ks[1], n_observations, hidden)
    w2, b2 = lin(ks[2], ks[3], hidden, hidden)
    w3, b3 = lin(ks[4], ks[5], hidden, n_actions)
    return {"w1": w1, "b1": b1, "w2": w2, "b2": b2, "w3": w3, "b3": b3}


def dqn_reference(x, p):
    h1 = jnp.maximum(x @ p["w1"] + p["b1"], 0.0)
    h2 = jnp.maximum(h1 @ p["w2"] + p["b2"], 0.0)
    return h2 @ p["w3"] + p["b3"]


if __name__ == "__main__":
    key = jax.random.PRNGKey(0)
    n_observations, n_actions = 32, 4

    kp, kx1, kx2 = jax.random.split(key, 3)
    params = init_params(kp, n_observations, n_actions)

    # One-time parameter prep (hoisted out of the per-call hot path).
    prepped_f32 = prepare_params(params, use_bf16=False)
    prepped_bf16 = prepare_params(params)            # default bf16 fast path

    # 1) Tiny action-selection batch (B=2), f32 weights, tight tolerance.
    x_small = jax.random.normal(kx1, (2, n_observations), jnp.float32)
    out_small = jax.block_until_ready(dqn_forward(x_small, prepped_f32, n_actions))
    ref_small = dqn_reference(x_small, params)
    assert out_small.shape == (2, n_actions)
    assert jnp.allclose(out_small, ref_small, atol=1e-5, rtol=1e-5)

    # 2) Replay-sized batch (B=240, not a multiple of 8 -> exercises padding),
    #    single grid step, f32 weights.
    x_big = jax.random.normal(kx2, (240, n_observations), jnp.float32)
    out_big = jax.block_until_ready(dqn_forward(x_big, prepped_f32, n_actions))
    ref_big = dqn_reference(x_big, params)
    assert out_big.shape == (240, n_actions)
    assert jnp.allclose(out_big, ref_big, atol=1e-5, rtol=1e-5)

    # 3) Default bf16-weight path (f32 accumulation), loose tolerance.
    #    Note: only weights are bf16; x is cast in-kernel, biases/acc stay f32.
    out_bf16 = jax.block_until_ready(dqn_forward(x_big, prepped_bf16, n_actions))
    assert out_bf16.shape == (240, n_actions)
    assert jnp.allclose(out_bf16, ref_big, atol=5e-2, rtol=5e-2)

    # 4) Fused greedy-action kernel: chosen actions must be (near-)optimal under
    #    the f32 reference Q-values.
    act = jax.block_until_ready(dqn_select_action(x_big, prepped_f32, n_actions))
    assert act.shape == (240,)
    assert jnp.all((act >= 0) & (act < n_actions))
    picked_q = jnp.take_along_axis(ref_big, act[:, None], axis=1)[:, 0]
    assert jnp.all(picked_q >= ref_big.max(axis=1) - 1e-4)

    print("KERNEL_OK")
</pallas_src>

<mosaic_0001>
module attributes {stable_mosaic.version = 11 : i64} {
  func.func @_dqn_kernel(%arg0: i32, %arg1: memref<8x32xf32, #tpu.memory_space<vmem>>, %arg2: memref<32x128xf32, #tpu.memory_space<vmem>>, %arg3: memref<1x128xf32, #tpu.memory_space<vmem>>, %arg4: memref<128x128xf32, #tpu.memory_space<vmem>>, %arg5: memref<1x128xf32, #tpu.memory_space<vmem>>, %arg6: memref<128x128xf32, #tpu.memory_space<vmem>>, %arg7: memref<1x128xf32, #tpu.memory_space<vmem>>, %arg8: memref<8x128xf32, #tpu.memory_space<vmem>>) attributes {dimension_semantics = [#tpu.dimension_semantics<parallel>], iteration_bounds = array<i64: 1>, scalar_prefetch = 0 : i64, scratch_operands = 0 : i64, tpu.core_type = #tpu.core_type<tc>, window_params = [{transform_indices = @transform_0, window_bounds = array<i64: 8, 32>}, {pipeline_mode = #tpu.pipeline_mode<synchronous>, transform_indices = @transform_1, window_bounds = array<i64: 32, 128>}, {pipeline_mode = #tpu.pipeline_mode<synchronous>, transform_indices = @transform_2, window_bounds = array<i64: 1, 128>}, {pipeline_mode = #tpu.pipeline_mode<synchronous>, transform_indices = @transform_3, window_bounds = array<i64: 128, 128>}, {pipeline_mode = #tpu.pipeline_mode<synchronous>, transform_indices = @transform_4, window_bounds = array<i64: 1, 128>}, {pipeline_mode = #tpu.pipeline_mode<synchronous>, transform_indices = @transform_5, window_bounds = array<i64: 128, 128>}, {pipeline_mode = #tpu.pipeline_mode<synchronous>, transform_indices = @transform_6, window_bounds = array<i64: 1, 128>}, {transform_indices = @transform_7, window_bounds = array<i64: 8, 128>}]} {
    %c0 = arith.constant 0 : index
    %c0_0 = arith.constant 0 : index
    %0 = vector.load %arg1[%c0, %c0_0] : memref<8x32xf32, #tpu.memory_space<vmem>>, vector<8x32xf32>
    %c0_1 = arith.constant 0 : index
    %c0_2 = arith.constant 0 : index
    %1 = vector.load %arg2[%c0_1, %c0_2] : memref<32x128xf32, #tpu.memory_space<vmem>>, vector<32x128xf32>
    %cst = arith.constant dense<0.000000e+00> : vector<8x128xf32>
    %2 = tpu.matmul %0, %1, %cst {dimension_numbers = #tpu.dot_dimension_numbers<[1], [0], [0], [1], [0, 0, 1, 1], [], []>} : vector<8x32xf32>, vector<32x128xf32>, vector<8x128xf32> -> vector<8x128xf32>
    %c0_3 = arith.constant 0 : index
    %c0_4 = arith.constant 0 : index
    %3 = vector.load %arg3[%c0_3, %c0_4] : memref<1x128xf32, #tpu.memory_space<vmem>>, vector<1x128xf32>
    %4 = vector.broadcast %3 : vector<1x128xf32> to vector<8x128xf32>
    %5 = arith.addf %2, %4 : vector<8x128xf32>
    %cst_5 = arith.constant 0.000000e+00 : f32
    %6 = vector.broadcast %cst_5 : f32 to vector<8x128xf32>
    %7 = arith.maximumf %5, %6 : vector<8x128xf32>
    %c0_6 = arith.constant 0 : index
    %c0_7 = arith.constant 0 : index
    %8 = vector.load %arg4[%c0_6, %c0_7] : memref<128x128xf32, #tpu.memory_space<vmem>>, vector<128x128xf32>
    %cst_8 = arith.constant dense<0.000000e+00> : vector<8x128xf32>
    %9 = tpu.matmul %7, %8, %cst_8 {dimension_numbers = #tpu.dot_dimension_numbers<[1], [0], [0], [1], [0, 0, 1, 1], [], []>} : vector<8x128xf32>, vector<128x128xf32>, vector<8x128xf32> -> vector<8x128xf32>
    %c0_9 = arith.constant 0 : index
    %c0_10 = arith.constant 0 : index
    %10 = vector.load %arg5[%c0_9, %c0_10] : memref<1x128xf32, #tpu.memory_space<vmem>>, vector<1x128xf32>
    %11 = vector.broadcast %10 : vector<1x128xf32> to vector<8x128xf32>
    %12 = arith.addf %9, %11 : vector<8x128xf32>
    %cst_11 = arith.constant 0.000000e+00 : f32
    %13 = vector.broadcast %cst_11 : f32 to vector<8x128xf32>
    %14 = arith.maximumf %12, %13 : vector<8x128xf32>
    %c0_12 = arith.constant 0 : index
    %c0_13 = arith.constant 0 : index
    %15 = vector.load %arg6[%c0_12, %c0_13] : memref<128x128xf32, #tpu.memory_space<vmem>>, vector<128x128xf32>
    %cst_14 = arith.constant dense<0.000000e+00> : vector<8x128xf32>
    %16 = tpu.matmul %14, %15, %cst_14 {dimension_numbers = #tpu.dot_dimension_numbers<[1], [0], [0], [1], [0, 0, 1, 1], [], []>} : vector<8x128xf32>, vector<128x128xf32>, vector<8x128xf32> -> vector<8x128xf32>
    %c0_15 = arith.constant 0 : index
    %c0_16 = arith.constant 0 : index
    %17 = vector.load %arg7[%c0_15, %c0_16] : memref<1x128xf32, #tpu.memory_space<vmem>>, vector<1x128xf32>
    %18 = vector.broadcast %17 : vector<1x128xf32> to vector<8x128xf32>
    %19 = arith.addf %16, %18 : vector<8x128xf32>
    %c0_17 = arith.constant 0 : index
    %c0_18 = arith.constant 0 : index
    %20 = vector.load %arg8[%c0_17, %c0_18] : memref<8x128xf32, #tpu.memory_space<vmem>>, vector<8x128xf32>
    tpu.vector_store %arg8[%c0_17, %c0_18], %19 {strides = array<i32>} : memref<8x128xf32, #tpu.memory_space<vmem>>, vector<8x128xf32>,
    return
  }
  func.func @transform_0(%arg0: i32) -> (i32, i32) {
    %c0_i32 = arith.constant 0 : i32
    %c0_i32_0 = arith.constant 0 : i32
    return %arg0, %c0_i32 : i32, i32
  }
  func.func @transform_1(%arg0: i32) -> (i32, i32) {
    %c0_i32 = arith.constant 0 : i32
    %c0_i32_0 = arith.constant 0 : i32
    %c0_i32_1 = arith.constant 0 : i32
    return %c0_i32, %c0_i32_0 : i32, i32
  }
  func.func @transform_2(%arg0: i32) -> (i32, i32) {
    %c0_i32 = arith.constant 0 : i32
    %c0_i32_0 = arith.constant 0 : i32
    %c0_i32_1 = arith.constant 0 : i32
    return %c0_i32, %c0_i32_0 : i32, i32
  }
  func.func @transform_3(%arg0: i32) -> (i32, i32) {
    %c0_i32 = arith.constant 0 : i32
    %c0_i32_0 = arith.constant 0 : i32
    %c0_i32_1 = arith.constant 0 : i32
    return %c0_i32, %c0_i32_0 : i32, i32
  }
  func.func @transform_4(%arg0: i32) -> (i32, i32) {
    %c0_i32 = arith.constant 0 : i32
    %c0_i32_0 = arith.constant 0 : i32
    %c0_i32_1 = arith.constant 0 : i32
    return %c0_i32, %c0_i32_0 : i32, i32
  }
  func.func @transform_5(%arg0: i32) -> (i32, i32) {
    %c0_i32 = arith.constant 0 : i32
    %c0_i32_0 = arith.constant 0 : i32
    %c0_i32_1 = arith.constant 0 : i32
    return %c0_i32, %c0_i32_0 : i32, i32
  }
  func.func @transform_6(%arg0: i32) -> (i32, i32) {
    %c0_i32 = arith.constant 0 : i32
    %c0_i32_0 = arith.constant 0 : i32
    %c0_i32_1 = arith.constant 0 : i32
    return %c0_i32, %c0_i32_0 : i32, i32
  }
  func.func @transform_7(%arg0: i32) -> (i32, i32) {
    %c0_i32 = arith.constant 0 : i32
    %c0_i32_0 = arith.constant 0 : i32
    return %arg0, %c0_i32 : i32, i32
  }
}

</mosaic_0001>

<bundles_post_ra>
// kernel: dqn_forward.1
= control target key start
LH: loop header
LB: loop body
LE: loop exit
PB: predicated region body
PF: predicated region fallthrough
CT: control target
= control target key end

     0   :  { %12 = vsyncpa [#allocation3], 0  ;;  %s740_s0 = inlined_call_operand.vmem [shape: f32[8,32], index: 0, kind: input, shape index: {}]   ;;  %s741_s1 = inlined_call_operand.hbm [shape: f32[32,128], index: 1, kind: input, shape index: {}]   ;;  %s742_s2 = inlined_call_operand.vmem [shape: f32[1,128], index: 2, kind: input, shape index: {}]   ;;  %s743_s3 = inlined_call_operand.hbm [shape: f32[128,128], index: 3, kind: input, shape index: {}]   ;;  %s744_s4 = inlined_call_operand.vmem [shape: f32[1,128], index: 4, kind: input, shape index: {}]   ;;  %s745_s5 = inlined_call_operand.hbm [shape: f32[128,128], index: 5, kind: input, shape index: {}]   ;;  %s746_s6 = inlined_call_operand.vmem [shape: f32[1,128], index: 6, kind: input, shape index: {}]   ;;  %s747_s7 = inlined_call_operand.vmem [shape: f32[8,128], index: 7, kind: output, shape index: {}]  }
   0x1   :  { %13 = vsyncpa [#allocation5], 0  ;;  %s604_s24 = smov [#allocation4]   ;;  %s605_s26 = smov [#allocation2]  }
   0x2   :  { %s35_s25 = sshll.u32 %s604_s24, 4  ;;  %s21_s27 = sshll.u32 %s605_s26, 4  ;;  %s36_s25 = int_to_ptr.vmem [resolvable:$true] %s35_s25  ;;  %s652_s27 = int_to_ptr.vmem [resolvable:$true] %s21_s27 }
   0x3   :  { %s534_s30 = scalar_lea.hbm %s743_s3, 2048 }
   0x4   :  { %p535_p0 = scmp.ne.s32.totalorder %s743_s3, %s534_s30  ;;  %p538_p1 = scmp.lt.u32.totalorder %s534_s30, %s743_s3 }
   0x6   :  { %p540_p2 = pnand %p538_p1, %p535_p0 }
   0x8   :  { %543 = shalt.err (!%p540_p2)
}
   0x9   :  { %s544_s12 = scalar_lea.vmem %s36_s25, 2048  ;;  %p549_p4 = scmp.lt.s32.totalorder %s36_s25, %s36_s25 }
   0xa   :  { %p545_p3 = scmp.ne.s32.totalorder %s36_s25, %s544_s12  ;;  %p550_p5 = scmp.lt.s32.totalorder %s544_s12, %s544_s12 }
   0xc   :  { %p551_p6 = por %p550_p5, %p549_p4 }
   0xe   :  { %p552_p7 = pnand %p551_p6, %p545_p3 }
  0x10   :  { %555 = shalt.err (!%p552_p7)
}
  0x11   :  { %s606_s13 = smov 128   ;;  %s607_s14 = smov 8  }
  0x12   :  { %41 = dma.hbm_to_vmem [thread:$0]  %s743_s3, 2048, %s36_s25, [#allocation5], %s606_s13, %s606_s13, %s607_s14  }
  0x13   :  { %s556_s19 = scalar_lea.hbm %s741_s1, 512 }
  0x14   :  { %p557_p8 = scmp.ne.s32.totalorder %s741_s1, %s556_s19  ;;  %p560_p9 = scmp.lt.u32.totalorder %s556_s19, %s741_s1 }
  0x16   :  { %p562_p10 = pnand %p560_p9, %p557_p8 }
  0x18   :  { %565 = shalt.err (!%p562_p10)
}
  0x19   :  { %s566_s24 = scalar_lea.vmem %s652_s27, 512  ;;  %p571_p12 = scmp.lt.s32.totalorder %s652_s27, %s652_s27 }
  0x1a   :  { %p567_p11 = scmp.ne.s32.totalorder %s652_s27, %s566_s24  ;;  %p572_p13 = scmp.lt.s32.totalorder %s566_s24, %s566_s24 }
  0x1c   :  { %p573_p0 = por %p572_p13, %p571_p12 }
  0x1e   :  { %p574_p1 = pnand %p573_p0, %p567_p11 }
  0x20   :  { %577 = shalt.err (!%p574_p1)
}
  0x21   :  { %27 = dma.hbm_to_vmem [thread:$0]  %s741_s1, 512, %s652_s27, [#allocation3], %s606_s13, %s606_s13, %s607_s14  }
  0x22   :  { %s608_s26 = smov [#allocation6]   ;;  %s578_s8 = scalar_lea.hbm %s745_s5, 2048 }
  0x23   :  { %s49_s28 = sshll.u32 %s608_s26, 4  ;;  %p579_p2 = scmp.ne.s32.totalorder %s745_s5, %s578_s8  ;;  %s50_s28 = int_to_ptr.vmem [resolvable:$true] %s49_s28 }
  0x24   :  { %p582_p3 = scmp.lt.u32.totalorder %s578_s8, %s745_s5 }
  0x26   :  { %p584_p4 = pnand %p582_p3, %p579_p2 }
  0x28   :  { %587 = shalt.err (!%p584_p4)
}
  0x29   :  { %s588_s15 = scalar_lea.vmem %s50_s28, 2048  ;;  %p593_p6 = scmp.lt.s32.totalorder %s50_s28, %s50_s28 }
  0x2a   :  { %p589_p5 = scmp.ne.s32.totalorder %s50_s28, %s588_s15  ;;  %p594_p7 = scmp.lt.s32.totalorder %s588_s15, %s588_s15 }
  0x2c   :  { %p595_p8 = por %p594_p7, %p593_p6 }
  0x2e   :  { %p596_p9 = pnand %p595_p8, %p589_p5 }
  0x30   :  { %599 = shalt.err (!%p596_p9)
}
  0x31   :  { %55 = dma.hbm_to_vmem [thread:$0]  %s745_s5, 2048, %s50_s28, [#allocation5], %s606_s13, %s606_s13, %s607_s14  }
  0x32   :  { %600 = dma.done.wait [#allocation3], 512  }
  0x33   :  { %601 = vsyncadd [#allocation3], 4294966784 }
  0x34   :  { %602 = dma.done.wait [#allocation5], 4096  }
  0x35   :  { %603 = vsyncadd [#allocation5], 4294963200  ;;  %v609_v0 = vmov 0.0|0.0   ;;  %vm610_vm0 = vmmov 0   ;;  %v611_v1 = vmov 0.0   ;;  %v68_v2 = vld [vmem:[#allocation2] sm:$0xff] }
  0x36   :  { %472 = vmatprep.subr.bf16.mxu0 %v609_v0  ;;  %399 = vmatprep.mubr.msk.f32.mxu0 %vm610_vm0, %v611_v1  ;;  %v69_v3 = vld [vmem:[#allocation2 + $0x8] sm:$0xff]  ;;  %v70_v4 = vld [vmem:[#allocation2 + $0x10] sm:$0xff]  ;;  %v71_v6 = vld [vmem:[#allocation2 + $0x18] sm:$0xff]  ;;  %vm79_vm1 = vcmask 261120  }
  0x37   :  { %478 = vmatprep.subr.bf16.mxu1 %v609_v0  ;;  %434 = vmatprep.mubr.msk.f32.mxu1 %vm610_vm0, %v611_v1  ;;  %v473_v5 = vpack.c.bf16 %v69_v3, %v68_v2  ;;  %v154_v7 = vld [vmem:[#allocation4] sm:$0xff]  ;;  %v155_v8 = vld [vmem:[#allocation4 + $0x8] sm:$0xff]  ;;  %v156_v9 = vld [vmem:[#allocation4 + $0x10] sm:$0xff]  ;;  %v476_v11 = vpack.c.bf16 %v71_v6, %v70_v4 }
  0x38   :  { %v157_v10 = vld [vmem:[#allocation4 + $0x18] sm:$0xff]  ;;  %v479_v12 = vpack.c.bf16 %v155_v8, %v154_v7  ;;  %v158_v14 = vld [vmem:[#allocation4 + $0x20] sm:$0xff]  ;;  %v159_v15 = vld [vmem:[#allocation4 + $0x28] sm:$0xff] }
  0x39   :  { %474 = vmatpush3.bf16.msra.mxu0 %v473_v5  ;;  %v482_v13 = vpack.c.bf16 %v157_v10, %v156_v9  ;;  %v67_v16 = vld [vmem:[%s740_s0] sm:$0xff]  ;;  %v485_v17 = vpack.c.bf16 %v159_v15, %v158_v14  ;;  %v160_v18 = vld [vmem:[#allocation4 + $0x30] sm:$0xff]  ;;  %v161_v19 = vld [vmem:[#allocation4 + $0x38] sm:$0xff] }
  0x3a   :  { %475 = vmatprep.subr.bf16.mxu0 %v609_v0  ;;  %480 = vmatpush3.bf16.msra.mxu1 %v479_v12  ;;  %v488_v20 = vpack.c.bf16 %v161_v19, %v160_v18  ;;  %v162_v21 = vld [vmem:[#allocation4 + $0x40] sm:$0xff]  ;;  %v163_v22 = vld [vmem:[#allocation4 + $0x48] sm:$0xff]  ;;  %v164_v24 = vld [vmem:[#allocation4 + $0x50] sm:$0xff] }
  0x3b   :  { %481 = vmatprep.subr.bf16.mxu1 %v609_v0  ;;  %v491_v23 = vpack.c.bf16 %v163_v22, %v162_v21  ;;  %v165_v25 = vld [vmem:[#allocation4 + $0x58] sm:$0xff]  ;;  %v166_v27 = vld [vmem:[#allocation4 + $0x60] sm:$0xff]  ;;  %v167_v28 = vld [vmem:[#allocation4 + $0x68] sm:$0xff] }
  0x3c   :  { %v494_v26 = vpack.c.bf16 %v165_v25, %v164_v24  ;;  %v497_v29 = vpack.c.bf16 %v167_v28, %v166_v27  ;;  %v168_v30 = vld [vmem:[#allocation4 + $0x70] sm:$0xff]  ;;  %v169_v31 = vld [vmem:[#allocation4 + $0x78] sm:$0xff]  ;;  %v248_v33 = vld [vmem:[#allocation6] sm:$0xff] }
  0x3d   :  { %477 = vmatpush3.bf16.msra.mxu0 %v476_v11  ;;  %v500_v32 = vpack.c.bf16 %v169_v31, %v168_v30  ;;  %v249_v34 = vld [vmem:[#allocation6 + $0x8] sm:$0xff]  ;;  %v250_v35 = vld [vmem:[#allocation6 + $0x10] sm:$0xff]  ;;  %v251_v37 = vld [vmem:[#allocation6 + $0x18] sm:$0xff] }
  0x3e   :  { %502 = vmatprep.subr.bf16.mxu0 %v609_v0  ;;  %483 = vmatpush3.bf16.msra.mxu1 %v482_v13  ;;  %v503_v36 = vpack.c.bf16 %v249_v34, %v248_v33  ;;  %v506_v38 = vpack.c.bf16 %v251_v37, %v250_v35  ;;  %v252_v39 = vld [vmem:[#allocation6 + $0x20] sm:$0xff]  ;;  %v253_v40 = vld [vmem:[#allocation6 + $0x28] sm:$0xff]  ;;  %v254_v42 = vld [vmem:[#allocation6 + $0x30] sm:$0xff] }
  0x3f   :  { %484 = vmatprep.subr.bf16.mxu1 %v609_v0  ;;  %v509_v41 = vpack.c.bf16 %v253_v40, %v252_v39  ;;  %v255_v43 = vld [vmem:[#allocation6 + $0x38] sm:$0xff]  ;;  %v256_v45 = vld [vmem:[#allocation6 + $0x40] sm:$0xff]  ;;  %v257_v46 = vld [vmem:[#allocation6 + $0x48] sm:$0xff] }
  0x40   :  { %400 = vmatmul.mubr.msk.f32.vlgmr.msra.gmra.mrb[0].mxu0 %vm79_vm1, %v67_v16  ;;  %v512_v44 = vpack.c.bf16 %v255_v43, %v254_v42  ;;  %v515_v47 = vpack.c.bf16 %v257_v46, %v256_v45  ;;  %v258_v48 = vld [vmem:[#allocation6 + $0x50] sm:$0xff]  ;;  %v259_v49 = vld [vmem:[#allocation6 + $0x58] sm:$0xff]  ;;  %v260_v51 = vld [vmem:[#allocation6 + $0x60] sm:$0xff] }
  0x41   :  { %469 = vmatprep.mubr.msk.f32.mxu0 %vm610_vm0, %v611_v1  ;;  %504 = vmatpush3.bf16.msra.mxu0 %v503_v36  ;;  %v518_v50 = vpack.c.bf16 %v259_v49, %v258_v48  ;;  %v261_v52 = vld [vmem:[#allocation6 + $0x68] sm:$0xff]  ;;  %v348_v54 = vld [vmem:[%s742_s2] ss:$0 sm:$0xff]  ;;  %v262_v59 = vld [vmem:[#allocation6 + $0x70] sm:$0xff] }
  0x42   :  { %486 = vmatpush3.bf16.msra.mxu1 %v485_v17  ;;  %505 = vmatprep.subr.bf16.mxu0 %v609_v0  ;;  %v521_v53 = vpack.c.bf16 %v261_v52, %v260_v51  ;;  %v263_v60 = vld [vmem:[#allocation6 + $0x78] sm:$0xff]  ;;  %v350_v62 = vld [vmem:[%s744_s4] ss:$0 sm:$0xff] }
  0x43   :  { %487 = vmatprep.subr.bf16.mxu1 %v609_v0  ;;  %v524_v61 = vpack.c.bf16 %v263_v60, %v262_v59  ;;  %v351_v3 = vld [vmem:[%s746_s6] ss:$0 sm:$0xff] }
  0x45   :  { %507 = vmatpush3.bf16.msra.mxu0 %v506_v38 }
  0x46   :  { %489 = vmatpush3.bf16.msra.mxu1 %v488_v20  ;;  %508 = vmatprep.subr.bf16.mxu0 %v609_v0 }
  0x47   :  { %490 = vmatprep.subr.bf16.mxu1 %v609_v0 }
  0x49   :  { %510 = vmatpush3.bf16.msra.mxu0 %v509_v41 }
  0x4a   :  { %492 = vmatpush3.bf16.msra.mxu1 %v491_v23  ;;  %511 = vmatprep.subr.bf16.mxu0 %v609_v0 }
  0x4b   :  { %493 = vmatprep.subr.bf16.mxu1 %v609_v0 }
  0x4d   :  { %513 = vmatpush3.bf16.msra.mxu0 %v512_v44 }
  0x4e   :  { %495 = vmatpush3.bf16.msra.mxu1 %v494_v26  ;;  %514 = vmatprep.subr.bf16.mxu0 %v609_v0 }
  0x4f   :  { %496 = vmatprep.subr.bf16.mxu1 %v609_v0 }
  0x51   :  { %516 = vmatpush3.bf16.msra.mxu0 %v515_v47 }
  0x52   :  { %498 = vmatpush3.bf16.msra.mxu1 %v497_v29  ;;  %517 = vmatprep.subr.bf16.mxu0 %v609_v0 }
  0x53   :  { %499 = vmatprep.subr.bf16.mxu1 %v609_v0 }
  0x55   :  { %519 = vmatpush3.bf16.msra.mxu0 %v518_v50 }
  0x56   :  { %501 = vmatpush3.bf16.msra.mxu1 %v500_v32  ;;  %520 = vmatprep.subr.bf16.mxu0 %v609_v0 }
  0x59   :  { %522 = vmatpush3.bf16.msra.mxu0 %v521_v53 }
  0x5a   :  { %523 = vmatprep.subr.bf16.mxu0 %v609_v0 }
  0x5d   :  { %525 = vmatpush3.bf16.msra.mxu0 %v524_v61 }
 0x113   :  { %v149_v55 = vpop.f32.mrb[0].mxu0 }
 0x114   :  { %v150_v56 = vadd.f32 %v348_v54, %v149_v55  ;;  %v401_v57 = vpop.f32.mrb[1].mxu0 }
 0x116   :  { %v153_v58 = vmax.f32 %v150_v56, 0.0 }
 0x118   :  { %435 = vmatmul.mubr.f32.vlgmr.msra.gmra.mrb[0].mxu1 %v153_v58 }
 0x1eb   :  { %v243_v63 = vpop.f32.mrb[0].mxu1 }
 0x1ec   :  { %v244_v1 = vadd.f32 %v350_v62, %v243_v63  ;;  %v436_v0 = vpop.f32.mrb[1].mxu1 }
 0x1ee   :  { %v247_v2 = vmax.f32 %v244_v1, 0.0 }
 0x1f0   :  { %470 = vmatmul.mubr.f32.vlgmr.msra.gmra.mrb[2].mxu0 %v247_v2 }
 0x2c3   :  { %v337_v4 = vpop.f32.mrb[2].mxu0 }
 0x2c4   :  { %v338_v5 = vadd.f32 %v351_v3, %v337_v4  ;;  %v471_v6 = vpop.f32.mrb[3].mxu0 }
 0x2c6   :  { %341 = vst [vmem:[%s747_s7] sm:$0xff] %v338_v5 }
 0x2c7   :  { %346 = vsyncpa [#allocation3], 1 }
 0x2c8   :  { %347 = vsyncpa [#allocation5], 1 }

</bundles_post_ra>
